<compile_context>
chip_gen: v7x
topology: tpu7x:2x2x1
jax: 0.10.0
libtpu: 0.0.40
codegen_flags: <defaults>
</compile_context>

<pallas_src>
import math

import jax
import jax.numpy as jnp
import numpy as np
from jax.experimental import pallas as pl
from jax.experimental.pallas import tpu as pltpu

EPS = 1e-8          # PixelwiseNormalization eps
NEG_SLOPE = 0.2     # LeakyReLU slope
HW = 16             # 4 * 4 spatial positions of the base generator


# ---------------------------------------------------------------------------
# One-time host-side parameter preparation (pure weight rearrangement)
# ---------------------------------------------------------------------------
def prepare_params(params, *, nz, c0, nc, weight_dtype=jnp.bfloat16):
    """Fold PyTorch-layout weights into the kernel's flat layout.

    * He (equalized-LR) scales folded into the weights.
    * EqualizedLinear columns permuted from PyTorch order (c*16 + p) to
      position-major order (p*C0 + c), killing the NCHW->NHWC transpose.
    * 3x3 pad-1 conv on the fixed 4x4 grid AND the 1x1 to_rgb conv folded
      (they are affine back-to-back in this module) into a single
      (16*C0, nc*16) matrix whose output column order (n*16 + p) is already
      flattened NCHW.
    * 0/1 chunk-selection matrices for the per-pixel channel norm.
    * Matmul weights stored in `weight_dtype` (bf16 by default), biases in f32.
    """
    lin_scale = math.sqrt(2.0 / nz)
    c3_scale = math.sqrt(2.0 / (c0 * 9))
    crgb_scale = math.sqrt(2.0 / c0)

    w_lin = np.asarray(params["w_lin"], np.float32) * lin_scale    # (nz, 16*c0)
    b_lin = np.asarray(params["b_lin"], np.float32)                # (1, 16*c0)
    # new column q = p*c0 + c  <-  PyTorch column c*16 + p   (p = y*4 + x)
    src = (np.arange(HW)[:, None] + np.arange(c0)[None, :] * HW).reshape(-1)
    wlin = w_lin[:, src]
    blin = b_lin[:, src]

    # chunk-selection matrices: per-pixel mean over channels on the flat layout
    sel = np.kron(np.eye(HW, dtype=np.float32), np.ones((c0, 1), np.float32))
    smean = sel / np.float32(c0)                  # (16*c0, 16)
    sbcast = np.ascontiguousarray(sel.T)          # (16, 16*c0)

    # 3x3 conv (padding=1) on the fixed 4x4 grid -> position-channel matrix
    w3 = np.asarray(params["w3"], np.float32) * c3_scale           # HWIO (3,3,c0,c0)
    k3 = np.zeros((HW * c0, HW * c0), np.float32)
    for yo in range(4):
        for xo in range(4):
            po = yo * 4 + xo
            for yi in range(4):
                for xi in range(4):
                    dy, dx = yi - yo + 1, xi - xo + 1
                    if 0 <= dy < 3 and 0 <= dx < 3:
                        pi = yi * 4 + xi
                        k3[pi * c0:(pi + 1) * c0, po * c0:(po + 1) * c0] = w3[dy, dx]
    b3 = np.tile(np.asarray(params["b3"], np.float32).reshape(1, c0), (1, HW))

    # 1x1 to_rgb; output columns ordered n*16 + p  (== flattened NCHW)
    wrgb = np.asarray(params["wrgb"], np.float32) * crgb_scale     # (c0, nc)
    brgb = np.asarray(params["brgb"], np.float32).reshape(-1)      # (nc,)
    krgb = np.zeros((HW * c0, nc * HW), np.float32)
    brgb_t = np.zeros((1, nc * HW), np.float32)
    for p in range(HW):
        for n in range(nc):
            krgb[p * c0:(p + 1) * c0, n * HW + p] = wrgb[:, n]
            brgb_t[0, n * HW + p] = brgb[n]

    # Affine fold of conv3x3 -> to_rgb (no nonlinearity between them in the
    # module's alpha==0 path), done in f32 before any bf16 rounding.
    kfused = k3 @ krgb                            # (16*c0, nc*16)
    bfused = b3 @ krgb + brgb_t                   # (1, nc*16)

    host = {
        "wlin":   (wlin,   weight_dtype),
        "blin":   (blin,   jnp.float32),
        "smean":  (smean,  weight_dtype),
        "sbcast": (sbcast, weight_dtype),
        "kfused": (kfused, weight_dtype),
        "bfused": (bfused, jnp.float32),
    }
    return {k: jnp.asarray(v, dtype=d) for k, (v, d) in host.items()}


# ---------------------------------------------------------------------------
# Single fused kernel: pixelnorm -> linear -> lrelu -> pixelnorm -> fused conv
# ---------------------------------------------------------------------------
def _generator_kernel(z_ref, wlin_ref, blin_ref, smean_ref, sbcast_ref,
                      kfused_ref, bfused_ref, o_ref):
    f32 = jnp.float32
    z = z_ref[...]
    # pixelwise norm over the latent (feature) dim
    zn = z * jax.lax.rsqrt(jnp.mean(z * z, axis=1, keepdims=True) + EPS)

    # EqualizedLinear (He scale folded into wlin, columns position-major)
    # + LeakyReLU(0.2).  Weights may be bf16; accumulate in f32.
    wlin = wlin_ref[...]
    h = jnp.dot(zn.astype(wlin.dtype), wlin,
                preferred_element_type=f32) + blin_ref[...]
    h = jnp.where(h >= 0, h, NEG_SLOPE * h)

    # pixelwise norm over channels, on the flat (B, 16*C0) layout:
    # per-pixel mean of h^2 via a 0/1 selection matrix, broadcast back the
    # same way (no in-kernel reshape/transpose).
    smean = smean_ref[...]
    ms = jnp.dot((h * h).astype(smean.dtype), smean,
                 preferred_element_type=f32)                          # (B, 16)
    sbcast = sbcast_ref[...]
    inv = jnp.dot(jax.lax.rsqrt(ms + EPS).astype(sbcast.dtype), sbcast,
                  preferred_element_type=f32)                         # (B, 16*C0)
    xn = h * inv

    # Fused (3x3 pad-1 conv) @ (1x1 to_rgb): single matmul; output columns are
    # already in flattened-NCHW order.
    kfused = kfused_ref[...]
    o_ref[...] = (jnp.dot(xn.astype(kfused.dtype), kfused,
                          preferred_element_type=f32) + bfused_ref[...])


# ---------------------------------------------------------------------------
# Wrapper
# ---------------------------------------------------------------------------
def generator_forward(z, kparams, *, nc, batch_tile=256):
    B, nz = z.shape
    out_cols = nc * HW
    weights = (kparams["wlin"], kparams["blin"], kparams["smean"],
               kparams["sbcast"], kparams["kfused"], kparams["bfused"])

    if B <= batch_tile:
        # Small batch: single program, everything in VMEM, no grid (a grid
        # step's fixed overhead exceeds this kernel's entire compute).
        vmem = pl.BlockSpec(memory_space=pltpu.MemorySpace.VMEM)
        out_flat = pl.pallas_call(
            _generator_kernel,
            out_shape=jax.ShapeDtypeStruct((B, out_cols), jnp.float32),
            in_specs=[vmem] * 7,
            out_specs=vmem,
        )(z, *weights)
        # columns are already flattened NCHW: free reshape, no transpose
        return out_flat.reshape(B, nc, 4, 4)

    # Large batch: 1-D grid over batch tiles. Weights use a constant index_map
    # so they stay VMEM-resident across steps; the batch axis is "parallel"
    # (shards across the two TensorCores on v7x, harmless on v5e/v6e).
    pad = (-B) % batch_tile
    zp = jnp.pad(z, ((0, pad), (0, 0))) if pad else z
    bp = B + pad
    out_flat = pl.pallas_call(
        _generator_kernel,
        out_shape=jax.ShapeDtypeStruct((bp, out_cols), jnp.float32),
        grid=(bp // batch_tile,),
        in_specs=[pl.BlockSpec((batch_tile, nz), lambda i: (i, 0))]
                 + [pl.BlockSpec(w.shape, lambda i: (0, 0)) for w in weights],
        out_specs=pl.BlockSpec((batch_tile, out_cols), lambda i: (i, 0)),
        compiler_params=pltpu.CompilerParams(
            dimension_semantics=("parallel",)),
    )(zp, *weights)
    if pad:
        out_flat = out_flat[:B]
    return out_flat.reshape(B, nc, 4, 4)


# ---------------------------------------------------------------------------
# Pure-JAX reference (for correctness check) — mirrors the PyTorch forward.
# ---------------------------------------------------------------------------
def reference_forward(z, params, *, c0, nc):
    B, nz = z.shape
    lin_scale = math.sqrt(2.0 / nz)
    c3_scale = math.sqrt(2.0 / (c0 * 9))
    crgb_scale = math.sqrt(2.0 / c0)

    zn = z * jax.lax.rsqrt(jnp.mean(z * z, axis=1, keepdims=True) + EPS)
    h = zn @ (params["w_lin"] * lin_scale) + params["b_lin"]
    h = jnp.where(h >= 0, h, NEG_SLOPE * h)
    x = h.reshape(B, c0, 4, 4)
    x = x * jax.lax.rsqrt(jnp.mean(x * x, axis=1, keepdims=True) + EPS)
    x_nhwc = jnp.transpose(x, (0, 2, 3, 1))
    conv = jax.lax.conv_general_dilated(
        x_nhwc, params["w3"] * c3_scale, window_strides=(1, 1), padding="SAME",
        dimension_numbers=("NHWC", "HWIO", "NHWC"))
    conv = conv + params["b3"].reshape(1, 1, 1, -1)
    rgb = jnp.einsum("bhwc,cn->bhwn", conv, params["wrgb"] * crgb_scale)
    rgb = rgb + params["brgb"].reshape(1, 1, 1, -1)
    return jnp.transpose(rgb, (0, 3, 1, 2))


# ---------------------------------------------------------------------------
if __name__ == "__main__":
    # Small shapes consistent with the module: nz=32, depth_scale_0=32, nc=3, B=2
    B, NZ, C0, NC = 2, 32, 32, 3

    key = jax.random.PRNGKey(0)
    k1, k2, k3_, k4, k5, k6, kz = jax.random.split(key, 7)

    params = {
        # EqualizedLinear(nz, 16*C0): raw N(0,1) weight stored [in, out]
        "w_lin": jax.random.normal(k1, (NZ, 16 * C0), jnp.float32),
        "b_lin": 0.1 * jax.random.normal(k2, (1, 16 * C0), jnp.float32),
        # EqualizedConv2d(C0, C0, k=3, p=1): HWIO
        "w3": jax.random.normal(k3_, (3, 3, C0, C0), jnp.float32),
        "b3": 0.1 * jax.random.normal(k4, (1, C0), jnp.float32),
        # EqualizedConv2d(C0, nc, k=1): stored as [C_in, nc]
        "wrgb": jax.random.normal(k5, (C0, NC), jnp.float32),
        "brgb": 0.1 * jax.random.normal(k6, (1, NC), jnp.float32),
    }
    z = jax.random.normal(kz, (B, NZ), jnp.float32)

    ref = jax.block_until_ready(reference_forward(z, params, c0=C0, nc=NC))

    # (1) f32 weights: tight structural check of the fused kernel.
    kp_f32 = prepare_params(params, nz=NZ, c0=C0, nc=NC,
                            weight_dtype=jnp.float32)
    out_f32 = jax.block_until_ready(generator_forward(z, kp_f32, nc=NC))
    assert out_f32.shape == (B, NC, 4, 4), out_f32.shape
    np.testing.assert_allclose(np.asarray(out_f32), np.asarray(ref),
                               rtol=1e-4, atol=1e-4)

    # (2) bf16 weights (production config: halves HBM weight DMA) — looser tol.
    kp = prepare_params(params, nz=NZ, c0=C0, nc=NC)   # bf16 by default
    out = jax.block_until_ready(generator_forward(z, kp, nc=NC))
    assert out.shape == (B, NC, 4, 4), out.shape
    np.testing.assert_allclose(np.asarray(out), np.asarray(ref),
                               rtol=5e-2, atol=5e-2)

    # (3) Large-batch path: batch-tiled grid with VMEM-resident weights and a
    #     "parallel" batch axis (both TensorCores on v7x).
    BL = 512
    zl = jax.random.normal(jax.random.PRNGKey(1), (BL, NZ), jnp.float32)
    out_l = jax.block_until_ready(
        generator_forward(zl, kp, nc=NC, batch_tile=256))
    ref_l = jax.block_until_ready(reference_forward(zl, params, c0=C0, nc=NC))
    assert out_l.shape == (BL, NC, 4, 4), out_l.shape
    np.testing.assert_allclose(np.asarray(out_l), np.asarray(ref_l),
                               rtol=5e-2, atol=5e-2)

    print("KERNEL_OK")
</pallas_src>

<mosaic_0001>
module attributes {stable_mosaic.version = 11 : i64} {
  func.func @_generator_kernel(%arg0: memref<2x32xf32, #tpu.memory_space<vmem>>, %arg1: memref<32x512xf32, #tpu.memory_space<vmem>>, %arg2: memref<1x512xf32, #tpu.memory_space<vmem>>, %arg3: memref<512x16xf32, #tpu.memory_space<vmem>>, %arg4: memref<16x512xf32, #tpu.memory_space<vmem>>, %arg5: memref<512x48xf32, #tpu.memory_space<vmem>>, %arg6: memref<1x48xf32, #tpu.memory_space<vmem>>, %arg7: memref<2x48xf32, #tpu.memory_space<vmem>>) attributes {dimension_semantics = [], scalar_prefetch = 0 : i64, scratch_operands = 0 : i64, tpu.core_type = #tpu.core_type<tc>} {
    %c0 = arith.constant 0 : index
    %c0_0 = arith.constant 0 : index
    %0 = vector.load %arg0[%c0, %c0_0] : memref<2x32xf32, #tpu.memory_space<vmem>>, vector<2x32xf32>
    %1 = arith.mulf %0, %0 : vector<2x32xf32>
    %cst = arith.constant dense<0.000000e+00> : vector<2xf32>
    %2 = vector.multi_reduction <add>, %1, %cst [1] : vector<2x32xf32> to vector<2xf32>
    %3 = vector.shape_cast %2 : vector<2xf32> to vector<2x1xf32>
    %cst_1 = arith.constant 3.200000e+01 : f32
    %4 = vector.broadcast %cst_1 : f32 to vector<2x1xf32>
    %5 = arith.divf %3, %4 : vector<2x1xf32>
    %cst_2 = arith.constant 9.99999993E-9 : f32
    %6 = vector.broadcast %cst_2 : f32 to vector<2x1xf32>
    %7 = arith.addf %5, %6 : vector<2x1xf32>
    %8 = math.rsqrt %7 : vector<2x1xf32>
    %9 = vector.broadcast %8 : vector<2x1xf32> to vector<2x32xf32>
    %10 = arith.mulf %0, %9 : vector<2x32xf32>
    %c0_3 = arith.constant 0 : index
    %c0_4 = arith.constant 0 : index
    %11 = vector.load %arg1[%c0_3, %c0_4] : memref<32x512xf32, #tpu.memory_space<vmem>>, vector<32x512xf32>
    %cst_5 = arith.constant dense<0.000000e+00> : vector<2x512xf32>
    %12 = tpu.matmul %10, %11, %cst_5 {dimension_numbers = #tpu.dot_dimension_numbers<[1], [0], [0], [1], [0, 0, 1, 1], [], []>} : vector<2x32xf32>, vector<32x512xf32>, vector<2x512xf32> -> vector<2x512xf32>
    %c0_6 = arith.constant 0 : index
    %c0_7 = arith.constant 0 : index
    %13 = vector.load %arg2[%c0_6, %c0_7] : memref<1x512xf32, #tpu.memory_space<vmem>>, vector<1x512xf32>
    %14 = vector.broadcast %13 : vector<1x512xf32> to vector<2x512xf32>
    %15 = arith.addf %12, %14 : vector<2x512xf32>
    %cst_8 = arith.constant 0.000000e+00 : f32
    %16 = vector.broadcast %cst_8 : f32 to vector<2x512xf32>
    %17 = arith.cmpf oge, %15, %16 : vector<2x512xf32>
    %cst_9 = arith.constant 2.000000e-01 : f32
    %18 = vector.broadcast %cst_9 : f32 to vector<2x512xf32>
    %19 = arith.mulf %18, %15 : vector<2x512xf32>
    %20 = arith.select %17, %15, %19 : vector<2x512xi1>, vector<2x512xf32>
    %c0_10 = arith.constant 0 : index
    %c0_11 = arith.constant 0 : index
    %21 = vector.load %arg3[%c0_10, %c0_11] : memref<512x16xf32, #tpu.memory_space<vmem>>, vector<512x16xf32>
    %22 = arith.mulf %20, %20 : vector<2x512xf32>
    %cst_12 = arith.constant dense<0.000000e+00> : vector<2x16xf32>
    %23 = tpu.matmul %22, %21, %cst_12 {dimension_numbers = #tpu.dot_dimension_numbers<[1], [0], [0], [1], [0, 0, 1, 1], [], []>} : vector<2x512xf32>, vector<512x16xf32>, vector<2x16xf32> -> vector<2x16xf32>
    %c0_13 = arith.constant 0 : index
    %c0_14 = arith.constant 0 : index
    %24 = vector.load %arg4[%c0_13, %c0_14] : memref<16x512xf32, #tpu.memory_space<vmem>>, vector<16x512xf32>
    %cst_15 = arith.constant 9.99999993E-9 : f32
    %25 = vector.broadcast %cst_15 : f32 to vector<2x16xf32>
    %26 = arith.addf %23, %25 : vector<2x16xf32>
    %27 = math.rsqrt %26 : vector<2x16xf32>
    %cst_16 = arith.constant dense<0.000000e+00> : vector<2x512xf32>
    %28 = tpu.matmul %27, %24, %cst_16 {dimension_numbers = #tpu.dot_dimension_numbers<[1], [0], [0], [1], [0, 0, 1, 1], [], []>} : vector<2x16xf32>, vector<16x512xf32>, vector<2x512xf32> -> vector<2x512xf32>
    %29 = arith.mulf %20, %28 : vector<2x512xf32>
    %c0_17 = arith.constant 0 : index
    %c0_18 = arith.constant 0 : index
    %30 = vector.load %arg5[%c0_17, %c0_18] : memref<512x48xf32, #tpu.memory_space<vmem>>, vector<512x48xf32>
    %cst_19 = arith.constant dense<0.000000e+00> : vector<2x48xf32>
    %31 = tpu.matmul %29, %30, %cst_19 {dimension_numbers = #tpu.dot_dimension_numbers<[1], [0], [0], [1], [0, 0, 1, 1], [], []>} : vector<2x512xf32>, vector<512x48xf32>, vector<2x48xf32> -> vector<2x48xf32>
    %c0_20 = arith.constant 0 : index
    %c0_21 = arith.constant 0 : index
    %32 = vector.load %arg6[%c0_20, %c0_21] : memref<1x48xf32, #tpu.memory_space<vmem>>, vector<1x48xf32>
    %33 = vector.broadcast %32 : vector<1x48xf32> to vector<2x48xf32>
    %34 = arith.addf %31, %33 : vector<2x48xf32>
    %c0_22 = arith.constant 0 : index
    %c0_23 = arith.constant 0 : index
    %35 = vector.load %arg7[%c0_22, %c0_23] : memref<2x48xf32, #tpu.memory_space<vmem>>, vector<2x48xf32>
    tpu.vector_store %arg7[%c0_22, %c0_23], %34 {strides = array<i32>} : memref<2x48xf32, #tpu.memory_space<vmem>>, vector<2x48xf32>,
    return
  }
}

</mosaic_0001>

<bundles_post_ra>
// kernel: tpu_custom_call.1
= control target key start
LH: loop header
LB: loop body
LE: loop exit
PB: predicated region body
PF: predicated region fallthrough
CT: control target
= control target key end

     0   :  { %vm29_vm0 = vcmask 254976   ;;  %s1703_s0 = inlined_call_operand.vmem [shape: f32[2,32], index: 0, kind: input, shape index: {}]   ;;  %s1704_s1 = inlined_call_operand.vmem [shape: f32[32,512], index: 1, kind: input, shape index: {}]   ;;  %s1705_s2 = inlined_call_operand.vmem [shape: f32[1,512], index: 2, kind: input, shape index: {}]   ;;  %s1706_s3 = inlined_call_operand.vmem [shape: f32[512,16], index: 3, kind: input, shape index: {}]   ;;  %s1707_s4 = inlined_call_operand.vmem [shape: f32[16,512], index: 4, kind: input, shape index: {}]   ;;  %s1708_s5 = inlined_call_operand.vmem [shape: f32[512,48], index: 5, kind: input, shape index: {}]   ;;  %s1709_s6 = inlined_call_operand.vmem [shape: f32[1,48], index: 6, kind: input, shape index: {}]   ;;  %s1710_s7 = inlined_call_operand.hbm [shape: f32[2,48], index: 7, kind: output, shape index: {}]  }
   0x1   :  { %v1200_v0 = vld [vmem:[%s1703_s0] sm:$0x3] }
   0x2   :  { %12 = vsyncpa [#allocation3], 0  ;;  %v28_v1 = vmul.f32 %v1200_v0, %v1200_v0  ;;  %v39_v3 = vld [vmem:[%s1704_s1 + $0x8] sm:$0xff]  ;;  %v41_v5 = vld [vmem:[%s1704_s1 + $0x18] sm:$0xff]  ;;  %v1155_v10 = vmov 0.0   ;;  %vm76_vm1 = vcmask 261120  }
   0x3   :  { %v43_v4 = vld [vmem:[%s1704_s1 + $0x28] sm:$0xff]  ;;  %v45_v7 = vld [vmem:[%s1704_s1 + $0x38] sm:$0xff]  ;;  %v38_v8 = vld [vmem:[%s1704_s1] sm:$0xff]  ;;  %144 = vmatprep.mubr.f32.mxu0 %v1155_v10  ;;  %215 = vmatprep.mubr.f32.mxu1 %v1155_v10  ;;  %vm451_vm6 = vcmask 130048   ;;  %s1156_s17 = smov [#allocation2]   ;;  %vm812_vm7 = vcmask 386048  }
   0x4   :  { %v30_v2 = vsel %vm29_vm0, %v28_v1, 0.0  ;;  %v973_v6 = vpack.c.bf16 %v43_v4, %v39_v3  ;;  %v42_v9 = vld [vmem:[%s1704_s1 + $0x20] sm:$0xff]  ;;  %v981_v11 = vpack.c.bf16 %v45_v7, %v41_v5  ;;  %v40_v13 = vld [vmem:[%s1704_s1 + $0x10] sm:$0xff]  ;;  %v47_v15 = vld [vmem:[%s1704_s1 + $0x48] sm:$0xff]  ;;  %s820_s18 = sshll.u32 %s1156_s17, 4  ;;  %s821_s18 = int_to_ptr.vmem [resolvable:$true] %s820_s18 }
   0x5   :  { %31 = vadd.xlane.f32.xlu0 %v30_v2  ;;  %v975_v12 = vpack.c.bf16 %v42_v9, %v38_v8  ;;  %v44_v14 = vld [vmem:[%s1704_s1 + $0x30] sm:$0xff]  ;;  %v51_v17 = vld [vmem:[%s1704_s1 + $0x68] sm:$0xff]  ;;  %v49_v18 = vld [vmem:[%s1704_s1 + $0x58] sm:$0xff]  ;;  %s1131_s19 = scalar_lea.vmem %s821_s18, 32  ;;  %p1136_p1 = scmp.lt.s32.totalorder %s821_s18, %s821_s18 }
   0x6   :  { %974 = vmatprep.subr.bf16.mxu0 %v973_v6  ;;  %v983_v16 = vpack.c.bf16 %v44_v14, %v40_v13  ;;  %v53_v19 = vld [vmem:[%s1704_s1 + $0x78] sm:$0xff]  ;;  %982 = vmatprep.subr.bf16.mxu1 %v981_v11  ;;  %v977_v20 = vpack.c.bf16 %v51_v17, %v47_v15  ;;  %v46_v22 = vld [vmem:[%s1704_s1 + $0x40] sm:$0xff]  ;;  %v48_v24 = vld [vmem:[%s1704_s1 + $0x50] sm:$0xff]  ;;  %p1132_p0 = scmp.ne.s32.totalorder %s821_s18, %s1131_s19  ;;  %p1137_p2 = scmp.lt.s32.totalorder %s1131_s19, %s1131_s19 }
   0x7   :  { %976 = vmatpush1.bf16.msra.mxu0 %v975_v12  ;;  %v985_v21 = vpack.c.bf16 %v53_v19, %v49_v18  ;;  %v50_v23 = vld [vmem:[%s1704_s1 + $0x60] sm:$0xff]  ;;  %v52_v26 = vld [vmem:[%s1704_s1 + $0x70] sm:$0xff]  ;;  %v251_v29 = vld [vmem:[%s1706_s3 + $0x88] sm:$0xff] }
   0x8   :  { %984 = vmatpush1.bf16.msra.mxu1 %v983_v16  ;;  %v979_v25 = vpack.c.bf16 %v50_v23, %v46_v22  ;;  %978 = vmatprep.subr.bf16.mxu0 %v977_v20  ;;  %v987_v27 = vpack.c.bf16 %v52_v26, %v48_v24  ;;  %v250_v28 = vld [vmem:[%s1706_s3 + $0x80] sm:$0xff]  ;;  %v283_v32 = vld [vmem:[%s1706_s3 + $0x188] sm:$0xff]  ;;  %v252_v41 = vld [vmem:[%s1706_s3 + $0x90] sm:$0xff]  ;;  %p1138_p3 = por %p1137_p2, %p1136_p1 }
   0x9   :  { %986 = vmatprep.subr.bf16.mxu1 %v985_v21  ;;  %v282_v30 = vld [vmem:[%s1706_s3 + $0x180] sm:$0xff]  ;;  %v989_v31 = vpack.c.bf16 %v251_v29, %v250_v28  ;;  %v235_v38 = vld [vmem:[%s1706_s3 + $0x8] sm:$0xff]  ;;  %v253_v42 = vld [vmem:[%s1706_s3 + $0x98] sm:$0xff] }
   0xa   :  { %v1021_v33 = vpack.c.bf16 %v283_v32, %v282_v30  ;;  %v234_v37 = vld [vmem:[%s1706_s3] sm:$0xff]  ;;  %v267_v40 = vld [vmem:[%s1706_s3 + $0x108] sm:$0xff]  ;;  %v284_v43 = vld [vmem:[%s1706_s3 + $0x190] sm:$0xff]  ;;  %v993_v51 = vpack.c.bf16 %v253_v42, %v252_v41  ;;  %p1139_p4 = pnand %p1138_p3, %p1132_p0 }
   0xb   :  { %980 = vmatpush1.bf16.msra.mxu0 %v979_v25  ;;  %v266_v39 = vld [vmem:[%s1706_s3 + $0x100] sm:$0xff]  ;;  %v285_v44 = vld [vmem:[%s1706_s3 + $0x198] sm:$0xff]  ;;  %v991_v46 = vpack.c.bf16 %v235_v38, %v234_v37  ;;  %v236_v48 = vld [vmem:[%s1706_s3 + $0x10] sm:$0xff] }
   0xc   :  { %988 = vmatpush1.bf16.msra.mxu1 %v987_v27  ;;  %990 = vmatprep.subr.bf16.mxu0 %v989_v31  ;;  %v1023_v47 = vpack.c.bf16 %v267_v40, %v266_v39  ;;  %v237_v49 = vld [vmem:[%s1706_s3 + $0x18] sm:$0xff]  ;;  %v1025_v52 = vpack.c.bf16 %v285_v44, %v284_v43  ;;  %v268_v53 = vld [vmem:[%s1706_s3 + $0x110] sm:$0xff]  ;;  %v254_v55 = vld [vmem:[%s1706_s3 + $0xa0] sm:$0xff] }
   0xd   :  { %1022 = vmatprep.subr.bf16.mxu1 %v1021_v33  ;;  %v269_v54 = vld [vmem:[%s1706_s3 + $0x118] sm:$0xff]  ;;  %v255_v56 = vld [vmem:[%s1706_s3 + $0xa8] sm:$0xff]  ;;  %v286_v57 = vld [vmem:[%s1706_s3 + $0x1a0] sm:$0xff]  ;;  %v995_v59 = vpack.c.bf16 %v237_v49, %v236_v48 }
   0xe   :  { %v287_v58 = vld [vmem:[%s1706_s3 + $0x1a8] sm:$0xff]  ;;  %v1027_v60 = vpack.c.bf16 %v269_v54, %v268_v53  ;;  %v238_v61 = vld [vmem:[%s1706_s3 + $0x20] sm:$0xff]  ;;  %v997_v63 = vpack.c.bf16 %v255_v56, %v254_v55  ;;  %v256_v3 = vld [vmem:[%s1706_s3 + $0xb0] sm:$0xff] }
   0xf   :  { %v239_v62 = vld [vmem:[%s1706_s3 + $0x28] sm:$0xff]  ;;  %v270_v1 = vld [vmem:[%s1706_s3 + $0x120] sm:$0xff]  ;;  %v257_v4 = vld [vmem:[%s1706_s3 + $0xb8] sm:$0xff] }
  0x10   :  { %v271_v2 = vld [vmem:[%s1706_s3 + $0x128] sm:$0xff]  ;;  %v288_v5 = vld [vmem:[%s1706_s3 + $0x1b0] sm:$0xff]  ;;  %v289_v6 = vld [vmem:[%s1706_s3 + $0x1b8] sm:$0xff]  ;;  %v999_v7 = vpack.c.bf16 %v239_v62, %v238_v61  ;;  %v1001_v12 = vpack.c.bf16 %v257_v4, %v256_v3 }
  0x11   :  { %v1031_v8 = vpack.c.bf16 %v271_v2, %v270_v1  ;;  %v240_v9 = vld [vmem:[%s1706_s3 + $0x30] sm:$0xff]  ;;  %v241_v11 = vld [vmem:[%s1706_s3 + $0x38] sm:$0xff]  ;;  %v1033_v13 = vpack.c.bf16 %v289_v6, %v288_v5  ;;  %v258_v16 = vld [vmem:[%s1706_s3 + $0xc0] sm:$0xff]  ;;  %v56_v2 = vlaneseq }
  0x12   :  { %v272_v14 = vld [vmem:[%s1706_s3 + $0x130] sm:$0xff]  ;;  %v273_v15 = vld [vmem:[%s1706_s3 + $0x138] sm:$0xff]  ;;  %v259_v17 = vld [vmem:[%s1706_s3 + $0xc8] sm:$0xff]  ;;  %v1003_v20 = vpack.c.bf16 %v241_v11, %v240_v9 }
  0x13   :  { %v290_v18 = vld [vmem:[%s1706_s3 + $0x1c0] sm:$0xff]  ;;  %v291_v19 = vld [vmem:[%s1706_s3 + $0x1c8] sm:$0xff]  ;;  %v1035_v21 = vpack.c.bf16 %v273_v15, %v272_v14  ;;  %v1005_v24 = vpack.c.bf16 %v259_v17, %v258_v16  ;;  %v260_v28 = vld [vmem:[%s1706_s3 + $0xd0] sm:$0xff]  ;;  %v57_v3 = vshrl.u32 %v56_v2, 7 }
  0x14   :  { %v242_v22 = vld [vmem:[%s1706_s3 + $0x40] sm:$0xff]  ;;  %v243_v23 = vld [vmem:[%s1706_s3 + $0x48] sm:$0xff]  ;;  %v1037_v25 = vpack.c.bf16 %v291_v19, %v290_v18  ;;  %v261_v29 = vld [vmem:[%s1706_s3 + $0xd8] sm:$0xff] }
  0x15   :  { %v274_v26 = vld [vmem:[%s1706_s3 + $0x140] sm:$0xff]  ;;  %v275_v27 = vld [vmem:[%s1706_s3 + $0x148] sm:$0xff]  ;;  %v292_v30 = vld [vmem:[%s1706_s3 + $0x1d0] sm:$0xff]  ;;  %v1007_v32 = vpack.c.bf16 %v243_v23, %v242_v22  ;;  %v58_v4 = vsub.s32 0, %v57_v3  ;;  %v66_v5 = vsub.s32 2, %v57_v3 }
  0x16   :  { %v293_v31 = vld [vmem:[%s1706_s3 + $0x1d8] sm:$0xff]  ;;  %v1039_v33 = vpack.c.bf16 %v275_v27, %v274_v26  ;;  %v276_v38 = vld [vmem:[%s1706_s3 + $0x150] sm:$0xff]  ;;  %v262_v42 = vld [vmem:[%s1706_s3 + $0xe0] sm:$0xff] }
  0x17   :  { %v245_v37 = vld [vmem:[%s1706_s3 + $0x58] sm:$0xff]  ;;  %v263_v43 = vld [vmem:[%s1706_s3 + $0xe8] sm:$0xff]  ;;  %v294_v44 = vld [vmem:[%s1706_s3 + $0x1e0] sm:$0xff] }
  0x18   :  { %v277_v39 = vld [vmem:[%s1706_s3 + $0x158] sm:$0xff]  ;;  %v247_v48 = vld [vmem:[%s1706_s3 + $0x68] sm:$0xff]  ;;  %v264_v54 = vld [vmem:[%s1706_s3 + $0xf0] sm:$0xff] }
  0x19   :  { %v1043_v41 = vpack.c.bf16 %v277_v39, %v276_v38  ;;  %v265_v55 = vld [vmem:[%s1706_s3 + $0xf8] sm:$0xff]  ;;  %v296_v56 = vld [vmem:[%s1706_s3 + $0x1f0] sm:$0xff]  ;;  %v54_v6 = vld [vmem:[%s1705_s2] sm:$0xf] }
  0x1a   :  { %v59_v9 = vrot.slane %v54_v6, %v58_v4  ;;  %v67_v11 = vrot.slane %v54_v6, %v66_v5  ;;  %v306_v38 = vld [vmem:[%s1707_s4 + $0x20] sm:$0xff]  ;;  %v309_v39 = vld [vmem:[%s1707_s4 + $0x38] sm:$0xff]  ;;  %v603_v5 = vld [vmem:[%s1708_s5 + $0x10] sm:$0xff] }
  0x1b   :  { %v652_v2 = vld [vmem:[%s1708_s5 + $0x198] sm:$0xff] }
  0x92   :  { %v32_v34 = vpop.xlane.xlu0 %31 }
  0x93   :  { %v34_v35 = vmul.f32 0.03125, %v32_v34  ;;  %v244_v34 = vld [vmem:[%s1706_s3 + $0x50] sm:$0xff] }
  0x94   :  { %v1011_v40 = vpack.c.bf16 %v245_v37, %v244_v34  ;;  %v303_v34 = vld [vmem:[%s1707_s4 + $0x8] sm:$0xff] }
  0x95   :  { %v35_v36 = vadd.f32 1e-08, %v34_v35  ;;  %v1009_v35 = vpack.c.bf16 %v261_v29, %v260_v28 }
  0x97   :  { %1127 = vrsqrt.f32 %v35_v36  ;;  %v1041_v36 = vpack.c.bf16 %v293_v31, %v292_v30 }
  0xa1   :  { %v1128_v45 = vpop.eup %1127 }
  0xa2   :  { %v37_v50 = vmul.f32 %v1128_v45, %v1200_v0  ;;  %v1029_v0 = vpack.c.bf16 %v287_v58, %v286_v57  ;;  %v1013_v45 = vpack.c.bf16 %v263_v43, %v262_v42  ;;  %v1017_v57 = vpack.c.bf16 %v265_v55, %v264_v54  ;;  %v297_v58 = vld [vmem:[%s1706_s3 + $0x1f8] sm:$0xff]  ;;  %v304_v42 = vld [vmem:[%s1707_s4 + $0x10] sm:$0xff] }
  0xa3   :  { %v1049_v61 = vpack.c.bf16 %v297_v58, %v296_v56  ;;  %v308_v43 = vld [vmem:[%s1707_s4 + $0x30] sm:$0xff] }
  0xa4   :  { %828 = vmatmul.mubr.msk.f32.vlgmr.msra.gmra.mrb[0].mxu0 %vm76_vm1, %v37_v50  ;;  %829 = vmatmul.mubr.msk.f32.vlgmr.msra.gmra.mrb[0].mxu1 %vm76_vm1, %v37_v50 }
  0xa5   :  { %992 = vmatpush3.bf16.msra.mxu0 %v991_v46  ;;  %1024 = vmatpush3.bf16.msra.mxu1 %v1023_v47  ;;  %v295_v46 = vld [vmem:[%s1706_s3 + $0x1e8] sm:$0xff]  ;;  %v246_v47 = vld [vmem:[%s1706_s3 + $0x60] sm:$0xff] }
  0xa6   :  { %994 = vmatprep.subr.bf16.mxu0 %v993_v51  ;;  %1026 = vmatprep.subr.bf16.mxu1 %v1025_v52  ;;  %v1045_v49 = vpack.c.bf16 %v295_v46, %v294_v44  ;;  %v1015_v50 = vpack.c.bf16 %v247_v48, %v246_v47  ;;  %v278_v51 = vld [vmem:[%s1706_s3 + $0x160] sm:$0xff]  ;;  %v279_v52 = vld [vmem:[%s1706_s3 + $0x168] sm:$0xff]  ;;  %v1059_v44 = vpack.c.bf16 %v308_v43, %v304_v42 }
  0xa7   :  { %v1047_v53 = vpack.c.bf16 %v279_v52, %v278_v51  ;;  %v618_v46 = vld [vmem:[%s1708_s5 + $0x88] sm:$0xff]  ;;  %v649_v47 = vld [vmem:[%s1708_s5 + $0x180] sm:$0xff] }
  0xa8   :  { %v657_v42 = vld [vmem:[%s1708_s5 + $0x1c0] sm:$0xff]  ;;  %v658_v43 = vld [vmem:[%s1708_s5 + $0x1c8] sm:$0xff] }
  0xa9   :  { %996 = vmatpush3.bf16.msra.mxu0 %v995_v59  ;;  %1028 = vmatpush3.bf16.msra.mxu1 %v1027_v60  ;;  %v248_v59 = vld [vmem:[%s1706_s3 + $0x70] sm:$0xff]  ;;  %v249_v60 = vld [vmem:[%s1706_s3 + $0x78] sm:$0xff] }
  0xaa   :  { %998 = vmatprep.subr.bf16.mxu0 %v997_v63  ;;  %1030 = vmatprep.subr.bf16.mxu1 %v1029_v0  ;;  %v1019_v62 = vpack.c.bf16 %v249_v60, %v248_v59  ;;  %v280_v63 = vld [vmem:[%s1706_s3 + $0x170] sm:$0xff]  ;;  %v281_v0 = vld [vmem:[%s1706_s3 + $0x178] sm:$0xff]  ;;  %v601_v59 = vld [vmem:[%s1708_s5] sm:$0xff] }
  0xab   :  { %v1051_v1 = vpack.c.bf16 %v281_v0, %v280_v63  ;;  %v602_v60 = vld [vmem:[%s1708_s5 + $0x8] sm:$0xff]  ;;  %v619_v63 = vld [vmem:[%s1708_s5 + $0x90] sm:$0xff]  ;;  %v620_v0 = vld [vmem:[%s1708_s5 + $0x98] sm:$0xff] }
  0xad   :  { %1000 = vmatpush3.bf16.msra.mxu0 %v999_v7  ;;  %1032 = vmatpush3.bf16.msra.mxu1 %v1031_v8  ;;  %v62_v7 = vsub.s32 1, %v57_v3  ;;  %v70_v8 = vsub.s32 3, %v57_v3  ;;  %v1063_v3 = vpack.c.bf16 %v602_v60, %v601_v59  ;;  %v612_v59 = vld [vmem:[%s1708_s5 + $0x58] sm:$0xff] }
  0xae   :  { %1002 = vmatprep.subr.bf16.mxu0 %v1001_v12  ;;  %1034 = vmatprep.subr.bf16.mxu1 %v1033_v13 }
  0xaf   :  { %v63_v12 = vrot.slane %v54_v6, %v62_v7  ;;  %v71_v13 = vrot.slane %v54_v6, %v70_v8  ;;  %v604_v6 = vld [vmem:[%s1708_s5 + $0x18] sm:$0xff]  ;;  %v1065_v7 = vpack.c.bf16 %v620_v0, %v619_v63  ;;  %v629_v0 = vld [vmem:[%s1708_s5 + $0xe0] sm:$0xff] }
  0xb0   :  { %v644_v63 = vld [vmem:[%s1708_s5 + $0x158] sm:$0xff] }
  0xb1   :  { %1004 = vmatpush3.bf16.msra.mxu0 %v1003_v20  ;;  %1036 = vmatpush3.bf16.msra.mxu1 %v1035_v21 }
  0xb2   :  { %1006 = vmatprep.subr.bf16.mxu0 %v1005_v24  ;;  %1038 = vmatprep.subr.bf16.mxu1 %v1037_v25 }
  0xb5   :  { %1008 = vmatpush3.bf16.msra.mxu0 %v1007_v32  ;;  %1040 = vmatpush3.bf16.msra.mxu1 %v1039_v33 }
  0xb6   :  { %1010 = vmatprep.subr.bf16.mxu0 %v1009_v35  ;;  %1042 = vmatprep.subr.bf16.mxu1 %v1041_v36  ;;  %v307_v35 = vld [vmem:[%s1707_s4 + $0x28] sm:$0xff]  ;;  %v302_v36 = vld [vmem:[%s1707_s4] sm:$0xff] }
  0xb7   :  { %v1053_v37 = vpack.c.bf16 %v307_v35, %v303_v34  ;;  %v607_v35 = vld [vmem:[%s1708_s5 + $0x30] sm:$0xff] }
  0xb9   :  { %1012 = vmatpush3.bf16.msra.mxu0 %v1011_v40  ;;  %1044 = vmatpush3.bf16.msra.mxu1 %v1043_v41  ;;  %v1055_v40 = vpack.c.bf16 %v306_v38, %v302_v36  ;;  %v608_v36 = vld [vmem:[%s1708_s5 + $0x38] sm:$0xff] }
  0xba   :  { %1014 = vmatprep.subr.bf16.mxu0 %v1013_v45  ;;  %1046 = vmatprep.subr.bf16.mxu1 %v1045_v49  ;;  %v617_v45 = vld [vmem:[%s1708_s5 + $0x80] sm:$0xff]  ;;  %v650_v49 = vld [vmem:[%s1708_s5 + $0x188] sm:$0xff] }
  0xbb   :  { %v1061_v48 = vpack.c.bf16 %v618_v46, %v617_v45  ;;  %v609_v46 = vld [vmem:[%s1708_s5 + $0x40] sm:$0xff] }
  0xbd   :  { %1016 = vmatpush3.bf16.msra.mxu0 %v1015_v50  ;;  %1048 = vmatpush3.bf16.msra.mxu1 %v1047_v53  ;;  %v1093_v50 = vpack.c.bf16 %v650_v49, %v649_v47  ;;  %v610_v47 = vld [vmem:[%s1708_s5 + $0x48] sm:$0xff]  ;;  %v1109_v49 = vpack.c.bf16 %v658_v43, %v657_v42 }
  0xbe   :  { %1018 = vmatprep.subr.bf16.mxu0 %v1017_v57  ;;  %1050 = vmatprep.subr.bf16.mxu1 %v1049_v61  ;;  %v633_v61 = vld [vmem:[%s1708_s5 + $0x100] sm:$0xff] }
  0xc1   :  { %1020 = vmatpush3.bf16.msra.mxu0 %v1019_v62  ;;  %1052 = vmatpush3.bf16.msra.mxu1 %v1051_v1  ;;  %v634_v62 = vld [vmem:[%s1708_s5 + $0x108] sm:$0xff]  ;;  %v651_v1 = vld [vmem:[%s1708_s5 + $0x190] sm:$0xff] }
  0xc2   :  { %1054 = vmatprep.subr.bf16.mxu0 %v1053_v37  ;;  %v1095_v4 = vpack.c.bf16 %v634_v62, %v633_v61  ;;  %v1097_v8 = vpack.c.bf16 %v652_v2, %v651_v1  ;;  %v643_v62 = vld [vmem:[%s1708_s5 + $0x150] sm:$0xff]  ;;  %v630_v1 = vld [vmem:[%s1708_s5 + $0xe8] sm:$0xff]  ;;  %v661_v2 = vld [vmem:[%s1708_s5 + $0x1e0] sm:$0xff] }
 0x177   :  { %v146_v14 = vpop.f32.mrb[0].mxu0  ;;  %v217_v15 = vpop.f32.mrb[0].mxu1 }
 0x178   :  { %v147_v16 = vadd.f32 %v146_v14, %v59_v9  ;;  %v218_v17 = vadd.f32 %v217_v15, %v67_v11  ;;  %v148_v18 = vpop.f32.mrb[1].mxu0  ;;  %v219_v19 = vpop.f32.mrb[1].mxu1  ;;  %v635_v9 = vld [vmem:[%s1708_s5 + $0x110] sm:$0xff]  ;;  %v636_v11 = vld [vmem:[%s1708_s5 + $0x118] sm:$0xff]  ;;  %v622_v14 = vld [vmem:[%s1708_s5 + $0xa8] sm:$0xff] }
 0x179   :  { %v149_v20 = vadd.f32 %v148_v18, %v63_v12  ;;  %v220_v21 = vadd.f32 %v219_v19, %v71_v13  ;;  %v621_v12 = vld [vmem:[%s1708_s5 + $0xa0] sm:$0xff]  ;;  %v1099_v18 = vpack.c.bf16 %v636_v11, %v635_v9  ;;  %v614_v9 = vld [vmem:[%s1708_s5 + $0x68] sm:$0xff] }
 0x17a   :  { %vm222_vm2 = vcmp.ge.f32.partialorder %v147_v16, 0.0  ;;  %v226_v22 = vmul.f32 0.2, %v147_v16  ;;  %vm224_vm3 = vcmp.ge.f32.partialorder %v218_v17, 0.0  ;;  %v228_v23 = vmul.f32 0.2, %v218_v17 }
 0x17b   :  { %vm223_vm4 = vcmp.ge.f32.partialorder %v149_v20, 0.0  ;;  %v227_v24 = vmul.f32 0.2, %v149_v20  ;;  %vm225_vm5 = vcmp.ge.f32.partialorder %v220_v21, 0.0  ;;  %v229_v25 = vmul.f32 0.2, %v220_v21 }
 0x17c   :  { %v1450_v26 = vsel %vm222_vm2, %v147_v16, %v226_v22  ;;  %v1452_v27 = vsel %vm224_vm3, %v218_v17, %v228_v23  ;;  %v653_v15 = vld [vmem:[%s1708_s5 + $0x1a0] sm:$0xff]  ;;  %v654_v16 = vld [vmem:[%s1708_s5 + $0x1a8] sm:$0xff]  ;;  %v1067_v17 = vpack.c.bf16 %v604_v6, %v603_v5  ;;  %v1115_v5 = vpack.c.bf16 %v644_v63, %v643_v62 }
 0x17d   :  { %v1454_v28 = vsel %vm223_vm4, %v149_v20, %v227_v24  ;;  %v1456_v29 = vsel %vm225_vm5, %v220_v21, %v229_v25  ;;  %v298_v32 = vmul.f32 %v1450_v26, %v1450_v26  ;;  %v300_v33 = vmul.f32 %v1452_v27, %v1452_v27  ;;  %v605_v19 = vld [vmem:[%s1708_s5 + $0x20] sm:$0xff]  ;;  %v606_v20 = vld [vmem:[%s1708_s5 + $0x28] sm:$0xff]  ;;  %v623_v25 = vld [vmem:[%s1708_s5 + $0xb0] sm:$0xff] }
 0x17e   :  { %v299_v30 = vmul.f32 %v1454_v28, %v1454_v28  ;;  %v301_v31 = vmul.f32 %v1456_v29, %v1456_v29  ;;  %v1069_v21 = vpack.c.bf16 %v622_v14, %v621_v12  ;;  %v1101_v22 = vpack.c.bf16 %v654_v16, %v653_v15  ;;  %v637_v23 = vld [vmem:[%s1708_s5 + $0x120] sm:$0xff]  ;;  %v638_v24 = vld [vmem:[%s1708_s5 + $0x128] sm:$0xff]  ;;  %v631_v15 = vld [vmem:[%s1708_s5 + $0xf0] sm:$0xff] }
 0x17f   :  { %v1103_v34 = vpack.c.bf16 %v638_v24, %v637_v23  ;;  %v613_v6 = vld [vmem:[%s1708_s5 + $0x60] sm:$0xff]  ;;  %v646_v12 = vld [vmem:[%s1708_s5 + $0x168] sm:$0xff]  ;;  %v632_v16 = vld [vmem:[%s1708_s5 + $0xf8] sm:$0xff] }
 0x180   :  { %374 = vmatprep.mubr.f32.mxu0 %v299_v30  ;;  %444 = vmatprep.mubr.f32.mxu1 %v301_v31  ;;  %v624_v30 = vld [vmem:[%s1708_s5 + $0xb8] sm:$0xff]  ;;  %v655_v31 = vld [vmem:[%s1708_s5 + $0x1b0] sm:$0xff]  ;;  %v645_v11 = vld [vmem:[%s1708_s5 + $0x160] sm:$0xff] }
 0x181   :  { %375 = vmatmul.mubr.f32.vlgmr.msra.gmra.mrb[2].mxu0 %v298_v32  ;;  %445 = vmatmul.mubr.f32.vlgmr.msra.gmra.mrb[2].mxu1 %v300_v33  ;;  %v656_v32 = vld [vmem:[%s1708_s5 + $0x1b8] sm:$0xff]  ;;  %v1071_v33 = vpack.c.bf16 %v606_v20, %v605_v19  ;;  %v1073_v37 = vpack.c.bf16 %v624_v30, %v623_v25  ;;  %v1119_v14 = vpack.c.bf16 %v646_v12, %v645_v11  ;;  %v615_v20 = vld [vmem:[%s1708_s5 + $0x70] sm:$0xff] }
 0x182   :  { %519 = vmatprep.mubr.f32.mxu0 %v1155_v10  ;;  %590 = vmatprep.mubr.f32.mxu1 %v1155_v10  ;;  %v305_v10 = vld [vmem:[%s1707_s4 + $0x18] sm:$0xff]  ;;  %v1105_v38 = vpack.c.bf16 %v656_v32, %v655_v31  ;;  %v647_v24 = vld [vmem:[%s1708_s5 + $0x170] sm:$0xff] }
 0x183   :  { %v1057_v41 = vpack.c.bf16 %v309_v39, %v305_v10  ;;  %1056 = vmatpush1.bf16.msra.mxu0 %v1055_v40  ;;  %v639_v10 = vld [vmem:[%s1708_s5 + $0x130] sm:$0xff]  ;;  %v640_v39 = vld [vmem:[%s1708_s5 + $0x138] sm:$0xff]  ;;  %v625_v40 = vld [vmem:[%s1708_s5 + $0xc0] sm:$0xff] }
 0x184   :  { %1062 = vmatprep.subr.bf16.mxu0 %v1061_v48  ;;  %v1107_v45 = vpack.c.bf16 %v640_v39, %v639_v10  ;;  %v664_v19 = vld [vmem:[%s1708_s5 + $0x1f8] sm:$0xff] }
 0x185   :  { %1058 = vmatprep.subr.bf16.mxu1 %v1057_v41  ;;  %v626_v41 = vld [vmem:[%s1708_s5 + $0xc8] sm:$0xff]  ;;  %v648_v25 = vld [vmem:[%s1708_s5 + $0x178] sm:$0xff] }
 0x186   :  { %1060 = vmatpush1.bf16.msra.mxu1 %v1059_v44  ;;  %v1075_v44 = vpack.c.bf16 %v608_v36, %v607_v35  ;;  %v1077_v48 = vpack.c.bf16 %v626_v41, %v625_v40  ;;  %v1123_v30 = vpack.c.bf16 %v648_v25, %v647_v24  ;;  %v832_v40 = vld [vmem:[%s1709_s6] ss:$0 sm:$0xff] }
 0x187   :  { %1094 = vmatprep.subr.bf16.mxu1 %v1093_v50  ;;  %v641_v50 = vld [vmem:[%s1708_s5 + $0x140] sm:$0xff] }
 0x254   :  { %v865_v51 = vpop.f32.mrb[2].mxu0  ;;  %v900_v52 = vpop.f32.mrb[2].mxu1 }
 0x255   :  { %v866_v53 = vpop.f32.mrb[3].mxu0  ;;  %v901_v54 = vpop.f32.mrb[3].mxu1 }
 0x256   :  { %v867_v55 = vadd.f32 %v866_v53, %v865_v51  ;;  %v902_v56 = vadd.f32 %v901_v54, %v900_v52  ;;  %v642_v51 = vld [vmem:[%s1708_s5 + $0x148] sm:$0xff]  ;;  %v627_v52 = vld [vmem:[%s1708_s5 + $0xd0] sm:$0xff]  ;;  %v628_v53 = vld [vmem:[%s1708_s5 + $0xd8] sm:$0xff] }
 0x257   :  { %v659_v54 = vld [vmem:[%s1708_s5 + $0x1d0] sm:$0xff]  ;;  %v1081_v60 = vpack.c.bf16 %v628_v53, %v627_v52 }
 0x258   :  { %v377_v57 = vadd.f32 1e-08, %v867_v55  ;;  %v660_v55 = vld [vmem:[%s1708_s5 + $0x1d8] sm:$0xff] }
 0x259   :  { %v1113_v61 = vpack.c.bf16 %v660_v55, %v659_v54 }
 0x25a   :  { %v447_v58 = vadd.f32 %v902_v56, %v377_v57  ;;  %v1079_v56 = vpack.c.bf16 %v610_v47, %v609_v46  ;;  %v1111_v57 = vpack.c.bf16 %v642_v51, %v641_v50 }
 0x25c   :  { %1129 = vrsqrt.f32 %v447_v58  ;;  %v611_v58 = vld [vmem:[%s1708_s5 + $0x50] sm:$0xff] }
 0x266   :  { %v1130_v13 = vpop.eup %1129 }
 0x267   :  { %830 = vmatmul.mubr.msk.f32.vlgmr.msra.gmra.mrb[4].mxu0 %vm451_vm6, %v1130_v13  ;;  %831 = vmatmul.mubr.msk.f32.vlgmr.msra.gmra.mrb[4].mxu1 %vm451_vm6, %v1130_v13  ;;  %v1087_v13 = vpack.c.bf16 %v614_v9, %v613_v6 }
 0x268   :  { %1064 = vmatpush3.bf16.msra.mxu0 %v1063_v3  ;;  %1096 = vmatpush3.bf16.msra.mxu1 %v1095_v4  ;;  %v662_v3 = vld [vmem:[%s1708_s5 + $0x1e8] sm:$0xff]  ;;  %v1083_v4 = vpack.c.bf16 %v612_v59, %v611_v58 }
 0x269   :  { %1066 = vmatprep.subr.bf16.mxu0 %v1065_v7  ;;  %1098 = vmatprep.subr.bf16.mxu1 %v1097_v8  ;;  %v1085_v7 = vpack.c.bf16 %v630_v1, %v629_v0  ;;  %v1117_v8 = vpack.c.bf16 %v662_v3, %v661_v2 }
 0x26c   :  { %1068 = vmatpush3.bf16.msra.mxu0 %v1067_v17  ;;  %1100 = vmatpush3.bf16.msra.mxu1 %v1099_v18  ;;  %v663_v17 = vld [vmem:[%s1708_s5 + $0x1f0] sm:$0xff]  ;;  %v1089_v18 = vpack.c.bf16 %v632_v16, %v631_v15 }
 0x26d   :  { %1070 = vmatprep.subr.bf16.mxu0 %v1069_v21  ;;  %1102 = vmatprep.subr.bf16.mxu1 %v1101_v22  ;;  %v616_v21 = vld [vmem:[%s1708_s5 + $0x78] sm:$0xff]  ;;  %v1121_v22 = vpack.c.bf16 %v664_v19, %v663_v17 }
 0x26e   :  { %v1091_v23 = vpack.c.bf16 %v616_v21, %v615_v20 }
 0x270   :  { %1072 = vmatpush3.bf16.msra.mxu0 %v1071_v33  ;;  %1104 = vmatpush3.bf16.msra.mxu1 %v1103_v34 }
 0x271   :  { %1074 = vmatprep.subr.bf16.mxu0 %v1073_v37  ;;  %1106 = vmatprep.subr.bf16.mxu1 %v1105_v38 }
 0x274   :  { %1076 = vmatpush3.bf16.msra.mxu0 %v1075_v44  ;;  %1108 = vmatpush3.bf16.msra.mxu1 %v1107_v45 }
 0x275   :  { %1078 = vmatprep.subr.bf16.mxu0 %v1077_v48  ;;  %1110 = vmatprep.subr.bf16.mxu1 %v1109_v49 }
 0x278   :  { %1080 = vmatpush3.bf16.msra.mxu0 %v1079_v56  ;;  %1112 = vmatpush3.bf16.msra.mxu1 %v1111_v57 }
 0x279   :  { %1082 = vmatprep.subr.bf16.mxu0 %v1081_v60  ;;  %1114 = vmatprep.subr.bf16.mxu1 %v1113_v61 }
 0x27c   :  { %1084 = vmatpush3.bf16.msra.mxu0 %v1083_v4  ;;  %1116 = vmatpush3.bf16.msra.mxu1 %v1115_v5 }
 0x27d   :  { %1086 = vmatprep.subr.bf16.mxu0 %v1085_v7  ;;  %1118 = vmatprep.subr.bf16.mxu1 %v1117_v8 }
 0x280   :  { %1088 = vmatpush3.bf16.msra.mxu0 %v1087_v13  ;;  %1120 = vmatpush3.bf16.msra.mxu1 %v1119_v14 }
 0x281   :  { %1090 = vmatprep.subr.bf16.mxu0 %v1089_v18  ;;  %1122 = vmatprep.subr.bf16.mxu1 %v1121_v22 }
 0x284   :  { %1092 = vmatpush3.bf16.msra.mxu0 %v1091_v23  ;;  %1124 = vmatpush3.bf16.msra.mxu1 %v1123_v30 }
 0x33a   :  { %v521_v31 = vpop.f32.mrb[4].mxu0  ;;  %v592_v32 = vpop.f32.mrb[4].mxu1 }
 0x33b   :  { %v523_v33 = vpop.f32.mrb[5].mxu0  ;;  %v594_v34 = vpop.f32.mrb[5].mxu1  ;;  %v597_v37 = vmul.f32 %v521_v31, %v1450_v26  ;;  %v599_v38 = vmul.f32 %v592_v32, %v1452_v27 }
 0x33c   :  { %v598_v35 = vmul.f32 %v523_v33, %v1454_v28  ;;  %v600_v36 = vmul.f32 %v594_v34, %v1456_v29 }
 0x33e   :  { %736 = vmatprep.mubr.f32.mxu0 %v598_v35  ;;  %806 = vmatprep.mubr.f32.mxu1 %v600_v36 }
 0x33f   :  { %737 = vmatmul.mubr.f32.vlgmr.msra.gmra.mrb[6].mxu0 %v597_v37  ;;  %807 = vmatmul.mubr.f32.vlgmr.msra.gmra.mrb[6].mxu1 %v599_v38 }
 0x412   :  { %v935_v10 = vpop.f32.mrb[6].mxu0  ;;  %v970_v39 = vpop.f32.mrb[6].mxu1 }
 0x413   :  { %v936_v41 = vpop.f32.mrb[7].mxu0  ;;  %v971_v42 = vpop.f32.mrb[7].mxu1 }
 0x414   :  { %v937_v43 = vadd.f32 %v936_v41, %v935_v10  ;;  %v972_v28 = vadd.f32 %v971_v42, %v970_v39 }
 0x416   :  { %v739_v29 = vadd.f32 %v937_v43, %v832_v40 }
 0x418   :  { %v809_v26 = vadd.f32 %v972_v28, %v739_v29 }
 0x41a   :  { %813 = vst.msk [vmem:[#allocation2] sm:$0x3] %vm812_vm7, %v809_v26 }
 0x41b   :  { %1142 = shalt.err (!%p1139_p4)
}
 0x41c   :  { %s1143_s21 = scalar_lea.hbm %s1710_s7, 32 }
 0x41d   :  { %p1144_p5 = scmp.ne.s32.totalorder %s1710_s7, %s1143_s21  ;;  %p1147_p6 = scmp.lt.u32.totalorder %s1143_s21, %s1710_s7 }
 0x41f   :  { %p1149_p7 = pnand %p1147_p6, %p1144_p5 }
 0x421   :  { %1152 = shalt.err (!%p1149_p7)
}
 0x422   :  { %823 = dma.vmem_to_hbm [thread:$0]  %s821_s18, 32, %s1710_s7, [#allocation3]  }
 0x423   :  { %1153 = dma.done.wait [#allocation3], 32  }
 0x424   :  { %1154 = vsyncadd [#allocation3], 4294967264 }
 0x425   :  { %827 = vsyncpa [#allocation3], 1 }

</bundles_post_ra>
